<compile_context>
chip_gen: v5e
topology: v5e:2x2
jax: 0.10.0
libtpu: 0.0.40
codegen_flags: <defaults>
</compile_context>

<pallas_src>
import jax
import jax.numpy as jnp
from jax.experimental import pallas as pl
from jax.experimental.pallas import tpu as pltpu

HIDDEN = 128    # fc1 width (matches the PyTorch module)
OUT_PAD = 8     # fc2 output columns padded to 8 (num_outputs=2 for CartPole)


def _round_up(x, m):
    return ((x + m - 1) // m) * m


def qnet_kernel(x_ref, w1_ref, b1_ref, w2_ref, b2_ref, q_ref):
    x = x_ref[...]                                     # (TB, num_inputs) f32
    tb = x.shape[0]
    num_in = x.shape[1]

    # fc1: K = num_inputs (tiny). Skip the MXU — unrolled VPU broadcast MACs,
    # with the bias as the accumulator init. ReLU fused on the VPU.
    h = jnp.broadcast_to(b1_ref[...], (tb, HIDDEN))    # (TB, 128)
    for k in range(num_in):                            # static unroll (~4)
        h = h + x[:, k:k + 1] * w1_ref[k:k + 1, :]     # (TB,1)*(1,128) bcast
    h = jnp.maximum(h, 0.0)

    # fc2: K = 128 -> MXU matmul, f32 accumulate. w2/b2 arrive pre-padded to
    # OUT_PAD(=8) columns, so the store is only 8 lanes wide (16x less HBM
    # writeback than a 128-wide slab); MXU cost is identical either way.
    q = jnp.dot(h, w2_ref[...], preferred_element_type=jnp.float32)  # (TB, 8)
    q_ref[...] = (q + b2_ref[...]).astype(q_ref.dtype)


def qnet_forward(x, w1, b1, w2p, b2p, num_outputs, *, tb_max=4096):
    """x: (B, num_inputs) f32. w2p/b2p are pre-padded to OUT_PAD columns
    (see pad_fc2). Returns qvalues (B, num_outputs) f32."""
    B, num_in = x.shape

    # Defensive: batch tile must be a multiple of 8 sublanes.
    tb_max = max(8, (tb_max // 8) * 8)

    full = _round_up(B, 8)
    half = _round_up(pl.cdiv(B, 2), 8)
    if full <= min(tb_max, 256):
        TB = full                       # tiny acting-sized batch: one step
    elif half <= tb_max:
        TB = half                       # exactly 2 steps -> v7x megacore balance
    else:
        nsteps = pl.cdiv(B, tb_max)
        if nsteps % 2 == 1:
            nsteps += 1                 # keep an even step count for v7x
        TB = min(tb_max, _round_up(pl.cdiv(B, nsteps), 8))

    Bp = pl.cdiv(B, TB) * TB
    xp = x if Bp == B else jnp.pad(x, ((0, Bp - B), (0, 0)))
    grid = (Bp // TB,)

    flops = 2 * Bp * (num_in * HIDDEN + HIDDEN * OUT_PAD)
    bytes_accessed = 4 * (Bp * num_in + num_in * HIDDEN + HIDDEN
                          + HIDDEN * OUT_PAD + OUT_PAD + Bp * OUT_PAD)

    qp = pl.pallas_call(
        qnet_kernel,
        out_shape=jax.ShapeDtypeStruct((Bp, OUT_PAD), jnp.float32),
        grid=grid,
        in_specs=[
            pl.BlockSpec((TB, num_in), lambda i: (i, 0)),            # x tile
            pl.BlockSpec(memory_space=pltpu.MemorySpace.VMEM),       # w1
            pl.BlockSpec(memory_space=pltpu.MemorySpace.VMEM),       # b1
            pl.BlockSpec(memory_space=pltpu.MemorySpace.VMEM),       # w2 (pre-padded)
            pl.BlockSpec(memory_space=pltpu.MemorySpace.VMEM),       # b2 (pre-padded)
        ],
        out_specs=pl.BlockSpec((TB, OUT_PAD), lambda i: (i, 0)),
        compiler_params=pltpu.CompilerParams(
            dimension_semantics=("parallel",)),
        cost_estimate=pl.CostEstimate(
            flops=flops, transcendentals=0, bytes_accessed=bytes_accessed),
    )(xp, w1, b1, w2p, b2p)

    return qp[:B, :num_outputs]


def pad_fc2(w2, b2):
    """Pad fc2 params to OUT_PAD output columns. Do this ONCE at param init /
    target-network sync, never in the forward hot path."""
    O = w2.shape[1]
    w2p = jnp.zeros((HIDDEN, OUT_PAD), jnp.float32).at[:, :O].set(w2)
    b2p = jnp.zeros((1, OUT_PAD), jnp.float32).at[:, :O].set(b2)
    return w2p, b2p


def xavier_uniform(key, fan_in, fan_out):
    """nn.init.xavier_uniform equivalent; returns (fan_in, fan_out) = W.T layout."""
    limit = jnp.sqrt(6.0 / (fan_in + fan_out))
    return jax.random.uniform(
        key, (fan_in, fan_out), dtype=jnp.float32, minval=-limit, maxval=limit
    )


def make_qnet_params(key, num_inputs, num_outputs, hidden=HIDDEN):
    k1, k2, k3, k4 = jax.random.split(key, 4)
    # Weights xavier-uniform (as in QNet.__init__); biases use PyTorch Linear's
    # default U(-1/sqrt(fan_in), 1/sqrt(fan_in)) init.
    w1 = xavier_uniform(k1, num_inputs, hidden)                 # (in, 128)
    w2 = xavier_uniform(k2, hidden, num_outputs)                # (128, out)
    b1_lim = 1.0 / jnp.sqrt(jnp.float32(num_inputs))
    b2_lim = 1.0 / jnp.sqrt(jnp.float32(hidden))
    b1 = jax.random.uniform(k3, (1, hidden), jnp.float32, -b1_lim, b1_lim)
    b2 = jax.random.uniform(k4, (1, num_outputs), jnp.float32, -b2_lim, b2_lim)
    w2p, b2p = pad_fc2(w2, b2)   # padding hoisted out of the forward path
    return w1, b1, w2p, b2p


def _reference(x, w1, b1, w2p, b2p, num_outputs):
    h = jnp.maximum(x @ w1 + b1, 0.0)
    return (h @ w2p + b2p)[:, :num_outputs]


if __name__ == "__main__":
    # CartPole: 4 observation dims, 2 actions.
    num_inputs, num_outputs = 4, 2

    key = jax.random.PRNGKey(0)
    key_x, key_x2, key_p = jax.random.split(key, 3)
    w1, b1, w2p, b2p = make_qnet_params(key_p, num_inputs, num_outputs)

    # Small acting-sized batch (single grid step).
    x_small = jax.random.normal(key_x, (8, num_inputs), dtype=jnp.float32)
    q_small = qnet_forward(x_small, w1, b1, w2p, b2p, num_outputs)
    jax.block_until_ready(q_small)
    assert q_small.shape == (8, num_outputs)
    assert jnp.allclose(q_small,
                        _reference(x_small, w1, b1, w2p, b2p, num_outputs),
                        atol=1e-5, rtol=1e-5)

    # Replay-sized batch (2-step grid, even split across v7x TensorCores).
    x_big = jax.random.normal(key_x2, (2500, num_inputs), dtype=jnp.float32)
    q_big = qnet_forward(x_big, w1, b1, w2p, b2p, num_outputs)
    jax.block_until_ready(q_big)
    assert q_big.shape == (2500, num_outputs)
    assert jnp.allclose(q_big,
                        _reference(x_big, w1, b1, w2p, b2p, num_outputs),
                        atol=1e-5, rtol=1e-5)

    # Same batch with a non-multiple-of-8 tb_max, exercising the defensive
    # rounding and the even-step-count fallback (6 steps of TB=424).
    q_big2 = qnet_forward(x_big, w1, b1, w2p, b2p, num_outputs, tb_max=500)
    jax.block_until_ready(q_big2)
    assert q_big2.shape == (2500, num_outputs)
    assert jnp.allclose(q_big2,
                        _reference(x_big, w1, b1, w2p, b2p, num_outputs),
                        atol=1e-5, rtol=1e-5)

    print("KERNEL_OK")
</pallas_src>

<mosaic_0001>
module attributes {stable_mosaic.version = 11 : i64} {
  func.func @qnet_kernel(%arg0: i32, %arg1: memref<8x4xf32, #tpu.memory_space<vmem>>, %arg2: memref<4x128xf32, #tpu.memory_space<vmem>>, %arg3: memref<1x128xf32, #tpu.memory_space<vmem>>, %arg4: memref<128x8xf32, #tpu.memory_space<vmem>>, %arg5: memref<1x8xf32, #tpu.memory_space<vmem>>, %arg6: memref<8x8xf32, #tpu.memory_space<vmem>>) attributes {dimension_semantics = [#tpu.dimension_semantics<parallel>], iteration_bounds = array<i64: 1>, scalar_prefetch = 0 : i64, scratch_operands = 0 : i64, tpu.core_type = #tpu.core_type<tc>, window_params = [{transform_indices = @transform_0, window_bounds = array<i64: 8, 4>}, {pipeline_mode = #tpu.pipeline_mode<synchronous>, transform_indices = @transform_1, window_bounds = array<i64: 4, 128>}, {pipeline_mode = #tpu.pipeline_mode<synchronous>, transform_indices = @transform_2, window_bounds = array<i64: 1, 128>}, {pipeline_mode = #tpu.pipeline_mode<synchronous>, transform_indices = @transform_3, window_bounds = array<i64: 128, 8>}, {pipeline_mode = #tpu.pipeline_mode<synchronous>, transform_indices = @transform_4, window_bounds = array<i64: 1, 8>}, {transform_indices = @transform_5, window_bounds = array<i64: 8, 8>}]} {
    %c0 = arith.constant 0 : index
    %c0_0 = arith.constant 0 : index
    %0 = vector.load %arg1[%c0, %c0_0] : memref<8x4xf32, #tpu.memory_space<vmem>>, vector<8x4xf32>
    %c0_1 = arith.constant 0 : index
    %c0_2 = arith.constant 0 : index
    %1 = vector.load %arg3[%c0_1, %c0_2] : memref<1x128xf32, #tpu.memory_space<vmem>>, vector<1x128xf32>
    %2 = vector.shape_cast %1 : vector<1x128xf32> to vector<1x128xf32>
    %3 = vector.broadcast %2 : vector<1x128xf32> to vector<8x128xf32>
    %4 = vector.extract_strided_slice %0 {offsets = [0, 0], sizes = [8, 1], strides = [1, 1]} : vector<8x4xf32> to vector<8x1xf32>
    %c0_3 = arith.constant 0 : index
    %c0_4 = arith.constant 0 : index
    %5 = vector.load %arg2[%c0_3, %c0_4] : memref<4x128xf32, #tpu.memory_space<vmem>>, vector<1x128xf32>
    %6 = vector.broadcast %4 : vector<8x1xf32> to vector<8x128xf32>
    %7 = vector.broadcast %5 : vector<1x128xf32> to vector<8x128xf32>
    %8 = arith.mulf %6, %7 : vector<8x128xf32>
    %9 = arith.addf %3, %8 : vector<8x128xf32>
    %10 = vector.extract_strided_slice %0 {offsets = [0, 1], sizes = [8, 1], strides = [1, 1]} : vector<8x4xf32> to vector<8x1xf32>
    %c1 = arith.constant 1 : index
    %c0_5 = arith.constant 0 : index
    %11 = vector.load %arg2[%c1, %c0_5] : memref<4x128xf32, #tpu.memory_space<vmem>>, vector<1x128xf32>
    %12 = vector.broadcast %10 : vector<8x1xf32> to vector<8x128xf32>
    %13 = vector.broadcast %11 : vector<1x128xf32> to vector<8x128xf32>
    %14 = arith.mulf %12, %13 : vector<8x128xf32>
    %15 = arith.addf %9, %14 : vector<8x128xf32>
    %16 = vector.extract_strided_slice %0 {offsets = [0, 2], sizes = [8, 1], strides = [1, 1]} : vector<8x4xf32> to vector<8x1xf32>
    %c2 = arith.constant 2 : index
    %c0_6 = arith.constant 0 : index
    %17 = vector.load %arg2[%c2, %c0_6] : memref<4x128xf32, #tpu.memory_space<vmem>>, vector<1x128xf32>
    %18 = vector.broadcast %16 : vector<8x1xf32> to vector<8x128xf32>
    %19 = vector.broadcast %17 : vector<1x128xf32> to vector<8x128xf32>
    %20 = arith.mulf %18, %19 : vector<8x128xf32>
    %21 = arith.addf %15, %20 : vector<8x128xf32>
    %22 = vector.extract_strided_slice %0 {offsets = [0, 3], sizes = [8, 1], strides = [1, 1]} : vector<8x4xf32> to vector<8x1xf32>
    %c3 = arith.constant 3 : index
    %c0_7 = arith.constant 0 : index
    %23 = vector.load %arg2[%c3, %c0_7] : memref<4x128xf32, #tpu.memory_space<vmem>>, vector<1x128xf32>
    %24 = vector.broadcast %22 : vector<8x1xf32> to vector<8x128xf32>
    %25 = vector.broadcast %23 : vector<1x128xf32> to vector<8x128xf32>
    %26 = arith.mulf %24, %25 : vector<8x128xf32>
    %27 = arith.addf %21, %26 : vector<8x128xf32>
    %cst = arith.constant 0.000000e+00 : f32
    %28 = vector.broadcast %cst : f32 to vector<8x128xf32>
    %29 = arith.maximumf %27, %28 : vector<8x128xf32>
    %c0_8 = arith.constant 0 : index
    %c0_9 = arith.constant 0 : index
    %30 = vector.load %arg4[%c0_8, %c0_9] : memref<128x8xf32, #tpu.memory_space<vmem>>, vector<128x8xf32>
    %cst_10 = arith.constant dense<0.000000e+00> : vector<8x8xf32>
    %31 = tpu.matmul %29, %30, %cst_10 {dimension_numbers = #tpu.dot_dimension_numbers<[1], [0], [0], [1], [0, 0, 1, 1], [], []>} : vector<8x128xf32>, vector<128x8xf32>, vector<8x8xf32> -> vector<8x8xf32>
    %c0_11 = arith.constant 0 : index
    %c0_12 = arith.constant 0 : index
    %32 = vector.load %arg5[%c0_11, %c0_12] : memref<1x8xf32, #tpu.memory_space<vmem>>, vector<1x8xf32>
    %33 = vector.broadcast %32 : vector<1x8xf32> to vector<8x8xf32>
    %34 = arith.addf %31, %33 : vector<8x8xf32>
    %c0_13 = arith.constant 0 : index
    %c0_14 = arith.constant 0 : index
    %35 = vector.load %arg6[%c0_13, %c0_14] : memref<8x8xf32, #tpu.memory_space<vmem>>, vector<8x8xf32>
    tpu.vector_store %arg6[%c0_13, %c0_14], %34 {strides = array<i32>} : memref<8x8xf32, #tpu.memory_space<vmem>>, vector<8x8xf32>,
    return
  }
  func.func @transform_0(%arg0: i32) -> (i32, i32) {
    %c0_i32 = arith.constant 0 : i32
    %c0_i32_0 = arith.constant 0 : i32
    return %arg0, %c0_i32 : i32, i32
  }
  func.func @transform_1(%arg0: i32) -> (i32, i32) {
    %c0_i32 = arith.constant 0 : i32
    %c0_i32_0 = arith.constant 0 : i32
    %c0_i32_1 = arith.constant 0 : i32
    return %c0_i32, %c0_i32_0 : i32, i32
  }
  func.func @transform_2(%arg0: i32) -> (i32, i32) {
    %c0_i32 = arith.constant 0 : i32
    %c0_i32_0 = arith.constant 0 : i32
    %c0_i32_1 = arith.constant 0 : i32
    return %c0_i32, %c0_i32_0 : i32, i32
  }
  func.func @transform_3(%arg0: i32) -> (i32, i32) {
    %c0_i32 = arith.constant 0 : i32
    %c0_i32_0 = arith.constant 0 : i32
    %c0_i32_1 = arith.constant 0 : i32
    return %c0_i32, %c0_i32_0 : i32, i32
  }
  func.func @transform_4(%arg0: i32) -> (i32, i32) {
    %c0_i32 = arith.constant 0 : i32
    %c0_i32_0 = arith.constant 0 : i32
    %c0_i32_1 = arith.constant 0 : i32
    return %c0_i32, %c0_i32_0 : i32, i32
  }
  func.func @transform_5(%arg0: i32) -> (i32, i32) {
    %c0_i32 = arith.constant 0 : i32
    %c0_i32_0 = arith.constant 0 : i32
    return %arg0, %c0_i32 : i32, i32
  }
}

</mosaic_0001>

<bundles_post_ra>
// kernel: tpu_custom_call.1
= control target key start
LH: loop header
LB: loop body
LE: loop exit
PB: predicated region body
PF: predicated region fallthrough
CT: control target
= control target key end

     0   :  { %v160_v2 = vmov 0   ;;  %v161_v3 = vmov 2   ;;  %s267_s0 = inlined_call_operand.vmem [shape: f32[8,4], index: 0, kind: input, shape index: {}]   ;;  %s268_s1 = inlined_call_operand.vmem [shape: f32[4,128], index: 1, kind: input, shape index: {}]   ;;  %s269_s2 = inlined_call_operand.vmem [shape: f32[1,128], index: 2, kind: input, shape index: {}]   ;;  %s270_s3 = inlined_call_operand.vmem [shape: f32[128,8], index: 3, kind: input, shape index: {}]   ;;  %s271_s4 = inlined_call_operand.vmem [shape: f32[1,8], index: 4, kind: input, shape index: {}]   ;;  %s272_s5 = inlined_call_operand.hbm [shape: f32[8,8], index: 5, kind: output, shape index: {}]  }
   0x1   :  { %v21_v0 = vld [vmem:[%s267_s0] sm:$0xff]  ;;  %v75_v1 = vld [vmem:[%s270_s3 + $0x78] sm:$0xff]  ;;  %123 = vset.pattern.permute.xlu0 %v160_v2  ;;  %125 = vset.pattern.permute.xlu1 %v161_v3  ;;  %v74_v4 = vld [vmem:[%s270_s3 + $0x70] sm:$0xff] }
   0x2   :  { %29 = vperm.xlu0 %123, %v21_v0   ;;  %45 = vperm.xlu1 %125, %v21_v0   ;;  %v73_v5 = vld [vmem:[%s270_s3 + $0x68] sm:$0xff] }
   0x3   :  { %80 = vmatpush.msra.mxu0 %v75_v1 }
   0x5   :  { %81 = vmatpush.msra.mxu0 %v74_v4 }
   0x6   :  { %10 = vsyncpa [#allocation3], 0  ;;  %v72_v6 = vld [vmem:[%s270_s3 + $0x60] sm:$0xff]  ;;  %v71_v7 = vld [vmem:[%s270_s3 + $0x58] sm:$0xff]  ;;  %v162_v8 = vmov 1   ;;  %v163_v9 = vmov 3  }
   0x7   :  { %82 = vmatpush.msra.mxu0 %v73_v5  ;;  %v70_v10 = vld [vmem:[%s270_s3 + $0x50] sm:$0xff]  ;;  %v69_v11 = vld [vmem:[%s270_s3 + $0x48] sm:$0xff]  ;;  %v68_v12 = vld [vmem:[%s270_s3 + $0x40] sm:$0xff]  ;;  %s164_s10 = smov [#allocation2]   ;;  %vm100_vm0 = vcmask 64512  }
   0x8   :  { %v67_v13 = vld [vmem:[%s270_s3 + $0x38] sm:$0xff]  ;;  %v66_v14 = vld [vmem:[%s270_s3 + $0x30] sm:$0xff]  ;;  %v65_v15 = vld [vmem:[%s270_s3 + $0x28] sm:$0xff]  ;;  %s107_s11 = sshll.u32 %s164_s10, 4  ;;  %s108_s11 = int_to_ptr.vmem [resolvable:$true] %s107_s11 }
   0x9   :  { %83 = vmatpush.msra.mxu0 %v72_v6  ;;  %v64_v16 = vld [vmem:[%s270_s3 + $0x20] sm:$0xff]  ;;  %v63_v17 = vld [vmem:[%s270_s3 + $0x18] sm:$0xff]  ;;  %v62_v18 = vld [vmem:[%s270_s3 + $0x10] sm:$0xff] }
   0xa   :  { %124 = vset.pattern.permute.xlu0 %v162_v8  ;;  %126 = vset.pattern.permute.xlu1 %v163_v9  ;;  %v61_v19 = vld [vmem:[%s270_s3 + $0x8] sm:$0xff]  ;;  %v60_v20 = vld [vmem:[%s270_s3] sm:$0xff] }
   0xb   :  { %37 = vperm.xlu0 %124, %v21_v0   ;;  %53 = vperm.xlu1 %126, %v21_v0   ;;  %v129_v23 = vld [vmem:[%s268_s1] ss:$0 sm:$0xff]  ;;  %v131_v26 = vld [vmem:[%s268_s1 + $0x1] ss:$0 sm:$0xff]  ;;  %v130_v27 = vld [vmem:[%s268_s1 + $0x2] ss:$0 sm:$0xff] }
   0xc   :  { %84 = vmatpush.msra.mxu0 %v71_v7  ;;  %v128_v24 = vld [vmem:[%s269_s2] ss:$0 sm:$0xff]  ;;  %v132_v28 = vld [vmem:[%s268_s1 + $0x3] ss:$0 sm:$0xff]  ;;  %s109_s1 = sshll.u32 %s272_s5, 4  ;;  %s110_s1 = int_to_ptr.hbm [resolvable:$true] %s109_s1 }
   0xd   :  { %v133_v39 = vld [vmem:[%s271_s4] ss:$0 sm:$0xff] }
   0xe   :  { %85 = vmatpush.msra.mxu0 %v70_v10 }
  0x10   :  { %86 = vmatpush.msra.mxu0 %v69_v11 }
  0x12   :  { %87 = vmatpush.msra.mxu0 %v68_v12 }
  0x13   :  { %127 = vset.pattern.permute.xlu0 %v163_v9 }
  0x14   :  { %88 = vmatpush.msra.mxu0 %v67_v13 }
  0x16   :  { %89 = vmatpush.msra.mxu0 %v66_v14 }
  0x18   :  { %90 = vmatpush.msra.mxu0 %v65_v15 }
  0x1a   :  { %91 = vmatpush.msra.mxu0 %v64_v16 }
  0x1c   :  { %92 = vmatpush.msra.mxu0 %v63_v17 }
  0x1e   :  { %93 = vmatpush.msra.mxu0 %v62_v18 }
  0x20   :  { %94 = vmatpush.msra.mxu0 %v61_v19 }
  0x22   :  { %95 = vmatpush.msra.mxu0 %v60_v20 }
  0x74   :  { %v30_v21 = vpop.permute.xlu0 %29  ;;  %v46_v22 = vpop.permute.xlu1 %45 }
  0x75   :  { %v33_v25 = vmul.f32 %v129_v23, %v30_v21  ;;  %v49_v33 = vmul.f32 %v130_v27, %v46_v22 }
  0x77   :  { %v34_v31 = vadd.f32 %v128_v24, %v33_v25 }
  0x7d   :  { %v38_v29 = vpop.permute.xlu0 %37  ;;  %v54_v30 = vpop.permute.xlu1 %53 }
  0x7e   :  { %v41_v32 = vmul.f32 %v131_v26, %v38_v29  ;;  %v57_v35 = vmul.f32 %v132_v28, %v54_v30 }
  0x80   :  { %v42_v34 = vadd.f32 %v41_v32, %v34_v31 }
  0x82   :  { %v50_v36 = vadd.f32 %v49_v33, %v42_v34 }
  0x84   :  { %v58_v37 = vadd.f32 %v57_v35, %v50_v36 }
  0x86   :  { %v59_v38 = vmax.f32 %v58_v37, 0.0 }
  0x88   :  { %96 = vmatmul.f32.vlgmr.msra.gmra.mxu0 %v59_v38 }
 0x105   :  { %v97_v40 = vpop.f32.mrf.mxu0 }
 0x106   :  { %v98_v41 = vadd.f32 %v133_v39, %v97_v40 }
 0x108   :  { %101 = vst.msk [vmem:[#allocation2] sm:$0xff] %vm100_vm0, %v98_v41 }
 0x109   :  { %112 = dma.vmem_to_hbm [thread:$0]  %s108_s11, 128, %s110_s1, [#allocation3]  }
 0x10a   :  { %158 = dma.done.wait [#allocation3], 128  }
 0x10b   :  { %159 = vsyncadd [#allocation3], 4294967168 }
 0x10c   :  { %117 = vsyncpa [#allocation3], 1 }

</bundles_post_ra>
